<compile_context>
chip_gen: v7x
topology: tpu7x:2x2x1
jax: 0.10.0
libtpu: 0.0.40
codegen_flags: <defaults>
</compile_context>

<pallas_src>
import math

import jax
import jax.numpy as jnp
from jax.experimental import pallas as pl
from jax.experimental.pallas import tpu as pltpu


def _drop_path_kernel(scale_ref, x_ref, o_ref):
    # scale_ref: VMEM (block_rows, 1) float32 — per-row (or per-sample) scale.
    # x_ref/o_ref: VMEM (block_rows, block_cols) in the input's dtype.
    # f32 broadcast multiply, one downcast at the store.
    o_ref[...] = (x_ref[...] * scale_ref[...]).astype(o_ref.dtype)


def _sublane_pack(dtype) -> int:
    # Sublane packing factor: 8 for 4-byte, 16 for 2-byte, 32 for 1-byte dtypes.
    return max(8, 32 // jnp.dtype(dtype).itemsize)


def drop_path_pallas(x, drop_prob: float = 0.0, training: bool = False,
                     key=None, tile_rows: int | None = None,
                     tile_cols: int | None = None,
                     donate_input: bool = False):
    """Pallas implementation of drop_path() (per-sample stochastic depth)."""
    if drop_prob == 0.0 or not training:
        return x
    if key is None:
        raise ValueError("drop_path_pallas: a PRNG `key` is required when "
                         "training=True and drop_prob > 0.")
    keep_prob = 1.0 - drop_prob

    B = x.shape[0]
    D = math.prod(x.shape[1:])
    itemsize = jnp.dtype(x.dtype).itemsize
    pack = _sublane_pack(x.dtype)

    # Per-sample scale (torch semantics: Bernoulli(keep_prob) via floor(kp+U)).
    u = jax.random.uniform(key, (B,), dtype=jnp.float32)
    scale_sample = jnp.floor(keep_prob + u) / keep_prob          # (B,) float32

    # ~8 MiB tiles: ~7% per-step overhead on v7x, <2% on v6e/v5e; 4x tile
    # (double-buffered in + out) stays inside the explicit VMEM limit below.
    target_tile_bytes = 8 << 20
    io_alias = {1: 0} if donate_input else {}

    if D % 128 == 0:
        # ---- fast path: (B*rows, 128); blocks may span samples -------------
        rows = D // 128
        total_rows = B * rows
        x2 = x.reshape(total_rows, 128)
        scale = jnp.repeat(scale_sample, rows).reshape(total_rows, 1)

        max_rows = max(pack, (target_tile_bytes // (128 * itemsize)) // pack * pack)
        tr = max_rows if tile_rows is None else max(pack, (int(tile_rows) // pack) * pack)
        tr = min(tr, max_rows)
        if total_rows <= tr:
            tr = total_rows                       # single full-extent block
        n_tiles = pl.cdiv(total_rows, tr)

        x_tile_bytes = tr * 128 * itemsize
        vmem_limit = int(min(max(4 * x_tile_bytes + (4 << 20), 16 << 20), 40 << 20))

        out = pl.pallas_call(
            _drop_path_kernel,
            out_shape=jax.ShapeDtypeStruct((total_rows, 128), x.dtype),
            grid=(n_tiles,),
            in_specs=[
                pl.BlockSpec((tr, 1), lambda i: (i, 0)),       # per-row scale
                pl.BlockSpec((tr, 128), lambda i: (i, 0)),     # x tile
            ],
            out_specs=pl.BlockSpec((tr, 128), lambda i: (i, 0)),
            compiler_params=pltpu.CompilerParams(
                dimension_semantics=("parallel",),
                vmem_limit_bytes=vmem_limit),
            input_output_aliases=io_alias,
        )(scale, x2)
        return out.reshape(x.shape)

    # ---- fallback: D not a multiple of 128 → (B, D), boundary blocks --------
    x2 = x.reshape(B, D)
    scale = scale_sample.reshape(B, 1)

    sub_rows = ((B + 7) // 8) * 8        # VMEM sublane footprint of the B axis
    max_cols = max(128, (target_tile_bytes // (sub_rows * 128 * itemsize)) * 128)
    tc = max_cols if tile_cols is None else max(128, (int(tile_cols) // 128) * 128)
    tc = min(tc, max_cols)
    if D <= tc:
        tc = D                            # single full-extent block
    n_tiles = pl.cdiv(D, tc)

    x_tile_bytes = sub_rows * (((tc + 127) // 128) * 128) * itemsize
    vmem_limit = int(min(max(4 * x_tile_bytes + (4 << 20), 16 << 20), 40 << 20))

    out = pl.pallas_call(
        _drop_path_kernel,
        out_shape=jax.ShapeDtypeStruct((B, D), x.dtype),
        grid=(n_tiles,),
        in_specs=[
            pl.BlockSpec((B, 1), lambda d: (0, 0)),            # per-sample scale
            pl.BlockSpec((B, tc), lambda d: (0, d)),           # x tile
        ],
        out_specs=pl.BlockSpec((B, tc), lambda d: (0, d)),
        compiler_params=pltpu.CompilerParams(
            dimension_semantics=("parallel",),
            vmem_limit_bytes=vmem_limit),
        input_output_aliases=io_alias,
    )(scale, x2)
    return out.reshape(x.shape)


class DropPath:
    """JAX/Pallas counterpart of the PyTorch DropPath module."""

    def __init__(self, drop_prob=None):
        self.drop_prob = 0.0 if drop_prob is None else float(drop_prob)
        self.training = True

    def __call__(self, x, key=None):
        return drop_path_pallas(x, self.drop_prob, self.training, key=key)


def _reference(x, drop_prob, key):
    # Same math as torch: output = x / keep_prob * floor(keep_prob + U) — the
    # scale is kept in f32 (matches the kernel) and downcast once at the end.
    keep_prob = 1.0 - drop_prob
    u = jax.random.uniform(key, (x.shape[0],), dtype=jnp.float32)
    mask = jnp.floor(keep_prob + u).reshape((x.shape[0],) + (1,) * (x.ndim - 1))
    return (x.astype(jnp.float32) * (mask / keep_prob)).astype(x.dtype)


if __name__ == "__main__":
    root = jax.random.PRNGKey(0)
    kx, kdrop, kx2, kx3, kx4, kx5 = jax.random.split(root, 6)

    drop_prob = 0.3
    module = DropPath(drop_prob)
    module.training = True

    # 1) Small NCHW input consistent with the module's forward (fast path,
    #    D = 1024 multiple of 128, single block).
    B, C, H, W = 2, 4, 16, 16
    x = jax.random.normal(kx, (B, C, H, W), dtype=jnp.float32)
    out = jax.block_until_ready(module(x, kdrop))
    ref = _reference(x, drop_prob, kdrop)
    assert out.shape == x.shape and out.dtype == x.dtype
    assert jnp.allclose(out, ref, atol=1e-6, rtol=1e-5)

    # 2) Multi-tile fast path where a tile spans samples (rows/sample = 16,
    #    total_rows = 32, tile_rows = 8 → 4 grid steps).
    x2 = jax.random.normal(kx2, (2, 8, 16, 16), dtype=jnp.float32)
    out2 = jax.block_until_ready(
        drop_path_pallas(x2, drop_prob, True, key=kdrop, tile_rows=8))
    ref2 = _reference(x2, drop_prob, kdrop)
    assert jnp.allclose(out2, ref2, atol=1e-6, rtol=1e-5)

    # 3) Fast path with a non-dividing tile (total_rows = 24, tile = 16 →
    #    boundary last block).
    x3 = jax.random.normal(kx3, (3, 4, 16, 16), dtype=jnp.float32)
    out3 = jax.block_until_ready(
        drop_path_pallas(x3, drop_prob, True, key=kdrop, tile_rows=16))
    ref3 = _reference(x3, drop_prob, kdrop)
    assert jnp.allclose(out3, ref3, atol=1e-6, rtol=1e-5)

    # 4) Feature size not a multiple of 128 (fallback path, no padding pass).
    x4 = jax.random.normal(kx4, (2, 3, 5, 7), dtype=jnp.float32)
    out4 = jax.block_until_ready(drop_path_pallas(x4, drop_prob, True, key=kdrop))
    ref4 = _reference(x4, drop_prob, kdrop)
    assert jnp.allclose(out4, ref4, atol=1e-6, rtol=1e-5)

    # 5) Fallback path with multiple lane tiles + partial boundary block
    #    (D = 300, tile_cols = 128 → 3 grid steps).
    x5 = jax.random.normal(kx5, (2, 300), dtype=jnp.float32)
    out5 = jax.block_until_ready(
        drop_path_pallas(x5, drop_prob, True, key=kdrop, tile_cols=128))
    ref5 = _reference(x5, drop_prob, kdrop)
    assert jnp.allclose(out5, ref5, atol=1e-6, rtol=1e-5)

    # 6) bf16 input: scale stays f32 inside the kernel, single downcast.
    xb = jax.random.normal(kx, (B, C, H, W), dtype=jnp.bfloat16)
    outb = jax.block_until_ready(drop_path_pallas(xb, drop_prob, True, key=kdrop))
    refb = _reference(xb, drop_prob, kdrop)
    assert outb.dtype == jnp.bfloat16
    assert jnp.allclose(outb.astype(jnp.float32), refb.astype(jnp.float32),
                        atol=1e-2, rtol=1e-2)

    # 7) Eval / drop_prob==0 path must be identity.
    module.training = False
    out_eval = jax.block_until_ready(module(x, kdrop))
    assert jnp.array_equal(out_eval, x)
    assert jnp.array_equal(drop_path_pallas(x, 0.0, True, key=kdrop), x)

    # 8) Missing key on the training path must raise a clear error.
    try:
        drop_path_pallas(x, drop_prob, True, key=None)
        raise AssertionError("expected ValueError for missing key")
    except ValueError:
        pass

    print("KERNEL_OK")
</pallas_src>

<mosaic_0001>
module attributes {stable_mosaic.version = 11 : i64} {
  func.func @_drop_path_kernel(%arg0: i32, %arg1: memref<16x1xf32, #tpu.memory_space<vmem>>, %arg2: memref<16x128xf32, #tpu.memory_space<vmem>>, %arg3: memref<16x128xf32, #tpu.memory_space<vmem>>) attributes {dimension_semantics = [#tpu.dimension_semantics<parallel>], iteration_bounds = array<i64: 1>, scalar_prefetch = 0 : i64, scratch_operands = 0 : i64, tpu.core_type = #tpu.core_type<tc>, window_params = [{transform_indices = @transform_0, window_bounds = array<i64: 16, 1>}, {transform_indices = @transform_1, window_bounds = array<i64: 16, 128>}, {transform_indices = @transform_2, window_bounds = array<i64: 16, 128>}]} {
    %c0 = arith.constant 0 : index
    %c0_0 = arith.constant 0 : index
    %0 = vector.load %arg2[%c0, %c0_0] : memref<16x128xf32, #tpu.memory_space<vmem>>, vector<16x128xf32>
    %c0_1 = arith.constant 0 : index
    %c0_2 = arith.constant 0 : index
    %1 = vector.load %arg1[%c0_1, %c0_2] : memref<16x1xf32, #tpu.memory_space<vmem>>, vector<16x1xf32>
    %2 = vector.broadcast %1 : vector<16x1xf32> to vector<16x128xf32>
    %3 = arith.mulf %0, %2 : vector<16x128xf32>
    %c0_3 = arith.constant 0 : index
    %c0_4 = arith.constant 0 : index
    %4 = vector.load %arg3[%c0_3, %c0_4] : memref<16x128xf32, #tpu.memory_space<vmem>>, vector<16x128xf32>
    tpu.vector_store %arg3[%c0_3, %c0_4], %3 {strides = array<i32>} : memref<16x128xf32, #tpu.memory_space<vmem>>, vector<16x128xf32>,
    return
  }
  func.func @transform_0(%arg0: i32) -> (i32, i32) {
    %c0_i32 = arith.constant 0 : i32
    %c0_i32_0 = arith.constant 0 : i32
    return %arg0, %c0_i32 : i32, i32
  }
  func.func @transform_1(%arg0: i32) -> (i32, i32) {
    %c0_i32 = arith.constant 0 : i32
    %c0_i32_0 = arith.constant 0 : i32
    return %arg0, %c0_i32 : i32, i32
  }
  func.func @transform_2(%arg0: i32) -> (i32, i32) {
    %c0_i32 = arith.constant 0 : i32
    %c0_i32_0 = arith.constant 0 : i32
    return %arg0, %c0_i32 : i32, i32
  }
}

</mosaic_0001>

<bundles_post_ra>
// kernel: tpu_custom_call.1
= control target key start
LH: loop header
LB: loop body
LE: loop exit
PB: predicated region body
PF: predicated region fallthrough
CT: control target
= control target key end

     0   :  { %s118_s0 = inlined_call_operand.vmem [shape: f32[16,1], index: 0, kind: input, shape index: {}]   ;;  %s119_s1 = inlined_call_operand.vmem [shape: f32[16,128], index: 1, kind: input, shape index: {}]   ;;  %s120_s2 = inlined_call_operand.hbm [shape: f32[16,128], index: 2, kind: output, shape index: {}]  }
   0x1   :  { %v14_v0 = vld [vmem:[%s118_s0] sm:$0xff] }
   0x2   :  { %7 = vsyncpa [#allocation3], 0  ;;  %v75_v1 = vmov 0   ;;  %v15_v2 = vld [vmem:[%s118_s0 + $0x8] sm:$0xff]  ;;  %v12_v3 = vld [vmem:[%s119_s1] sm:$0xff]  ;;  %s76_s15 = smov [#allocation2]  }
   0x3   :  { %50 = vset.pattern.permute.xlu0 %v75_v1  ;;  %s35_s16 = sshll.u32 %s76_s15, 4  ;;  %v13_v6 = vld [vmem:[%s119_s1 + $0x8] sm:$0xff]  ;;  %s36_s16 = int_to_ptr.vmem [resolvable:$true] %s35_s16 }
   0x4   :  { %18 = vperm.xlu0 %50, %v14_v0   ;;  %s51_s19 = scalar_lea.vmem %s36_s16, 256  ;;  %p56_p1 = scmp.lt.s32.totalorder %s36_s16, %s36_s16 }
   0x5   :  { %p52_p0 = scmp.ne.s32.totalorder %s36_s16, %s51_s19  ;;  %p57_p2 = scmp.lt.s32.totalorder %s51_s19, %s51_s19 }
   0x7   :  { %p58_p3 = por %p57_p2, %p56_p1 }
   0x8   :  { %23 = vperm.xlu0 %50, %v15_v2  }
   0x9   :  { %p59_p4 = pnand %p58_p3, %p52_p0 }
  0x83   :  { %v19_v4 = vpop.permute.xlu0 %18 }
  0x84   :  { %v26_v5 = vmul.f32 %v19_v4, %v12_v3 }
  0x86   :  { %28 = vst [vmem:[#allocation2] sm:$0xff] %v26_v5 }
  0x87   :  { %v24_v7 = vpop.permute.xlu0 %23 }
  0x88   :  { %v27_v8 = vmul.f32 %v24_v7, %v13_v6 }
  0x8a   :  { %29 = vst [vmem:[#allocation2 + $0x8] sm:$0xff] %v27_v8 }
  0x8b   :  { %62 = shalt.err (!%p59_p4)
}
  0x8c   :  { %s63_s21 = scalar_lea.hbm %s120_s2, 256 }
  0x8d   :  { %p64_p5 = scmp.ne.s32.totalorder %s120_s2, %s63_s21  ;;  %p67_p6 = scmp.lt.u32.totalorder %s63_s21, %s120_s2 }
  0x8f   :  { %p69_p7 = pnand %p67_p6, %p64_p5 }
  0x91   :  { %72 = shalt.err (!%p69_p7)
}
  0x92   :  { %s77_s25 = smov 128   ;;  %s78_s26 = smov 8  }
  0x93   :  { %41 = dma.vmem_to_hbm [thread:$0]  %s36_s16, 256, %s120_s2, [#allocation3], %s77_s25, %s77_s25, %s78_s26  }
  0x94   :  { %73 = dma.done.wait [#allocation3], 256  }
  0x95   :  { %74 = vsyncadd [#allocation3], 4294967040 }
  0x96   :  { %45 = vsyncpa [#allocation3], 1 }

</bundles_post_ra>
